<compile_context>
chip_gen: v7x
topology: tpu7x:2x2x1
jax: 0.10.0
libtpu: 0.0.40
codegen_flags: <defaults>
</compile_context>

<pallas_src>
import jax
import jax.numpy as jnp
from jax.experimental import pallas as pl
from jax.experimental.pallas import tpu as pltpu

PACK = 4  # tokens packed per matmul row -> output last dim = PACK * E (= 128 for E=32)


def _round_up(x, m):
    return ((x + m - 1) // m) * m


def embedding_kernel(idx_ref, w_ref, out_ref):
    """One grid step: gather PACK tokens per row via a one-hot matmul on the MXU.

    idx_ref : (TM, PACK) int32 -- fused + slot-offset indices (idx + slot * 2V)
    w_ref   : (PACK*2V, PACK*E) block-diagonal stacked embedding table
    out_ref : (TM, PACK*E) -- PACK consecutive tokens' embeddings per row
    """
    idx = idx_ref[...]                                      # (TM, PACK)
    tm, pack = idx.shape
    kdim = w_ref.shape[0]                                   # PACK * 2V
    lane = jax.lax.broadcasted_iota(jnp.int32, (tm, kdim), 1)
    # Slot blocks are disjoint, so the sum of the PACK one-hots is itself one-hot.
    onehot = (idx[:, 0:1] == lane).astype(w_ref.dtype)
    for j in range(1, pack):                                # static unroll (pack == 4)
        onehot = onehot + (idx[:, j:j + 1] == lane).astype(w_ref.dtype)
    out_ref[...] = jnp.dot(onehot, w_ref[...],
                           preferred_element_type=jnp.float32).astype(out_ref.dtype)


def embedding_layer(peptide_x, mhc_x, pep_w, mhc_w, *,
                    peptide_pad=3, padding_idx=0, block_rows=1024):
    """Forward pass of EmbeddingLayer.

    peptide_x: (B, Lp) int indices; mhc_x: (B, Lm) int indices;
    pep_w / mhc_w: (V, E) embedding tables.
    Returns (peptide_emb (B, Lp, E), mhc_emb (B, Lm, E), masks (B, Lp-2*pad) bool).
    """
    B, Lp = peptide_x.shape
    _, Lm = mhc_x.shape
    V, E = pep_w.shape

    # masks = peptide_x[:, pad : Lp - pad] != padding_idx   (trivial VPU compare;
    # computed wrapper-side per perf review -- avoids an unaligned in-kernel slice
    # and a sub-128-lane masked store).
    masks = peptide_x[:, peptide_pad:Lp - peptide_pad] != padding_idx

    # Fused + block-diagonal table: (PACK*2V, PACK*E).
    w2 = jnp.concatenate([pep_w, mhc_w], axis=0)            # (2V, E)
    k2 = 2 * V
    w_bd = jnp.kron(jnp.eye(PACK, dtype=w2.dtype), w2)      # (PACK*2V, PACK*E)

    # Flatten, fuse and pack indices (wrapper-side layout plumbing, free in XLA).
    tok = jnp.concatenate(
        [peptide_x.reshape(B * Lp).astype(jnp.int32),
         mhc_x.reshape(B * Lm).astype(jnp.int32) + V], axis=0)   # (Ntok,)
    ntok = B * (Lp + Lm)
    n_rows = -(-ntok // PACK)
    tm = min(int(block_rows), _round_up(n_rows, 8))
    n_rows_pad = _round_up(n_rows, tm)
    tok = jnp.pad(tok, (0, n_rows_pad * PACK - ntok))        # pad with idx 0 (discarded)
    idx_packed = (tok.reshape(n_rows_pad, PACK)
                  + jnp.arange(PACK, dtype=jnp.int32)[None, :] * k2)

    kdim, ndim = PACK * k2, PACK * E
    flops = 2 * n_rows_pad * kdim * ndim
    bytes_accessed = idx_packed.size * 4 + w_bd.size * 4 + n_rows_pad * ndim * 4

    out = pl.pallas_call(
        embedding_kernel,
        out_shape=jax.ShapeDtypeStruct((n_rows_pad, ndim), pep_w.dtype),
        grid_spec=pltpu.PrefetchScalarGridSpec(
            num_scalar_prefetch=0,
            grid=(n_rows_pad // tm,),
            in_specs=[
                pl.BlockSpec((tm, PACK), lambda i: (i, 0),
                             memory_space=pltpu.MemorySpace.VMEM),
                pl.BlockSpec((kdim, ndim), lambda i: (0, 0),   # VMEM-resident table
                             memory_space=pltpu.MemorySpace.VMEM),
            ],
            out_specs=pl.BlockSpec((tm, ndim), lambda i: (i, 0),
                                   memory_space=pltpu.MemorySpace.VMEM),
        ),
        compiler_params=pltpu.CompilerParams(dimension_semantics=("parallel",)),
        cost_estimate=pl.CostEstimate(flops=flops, transcendentals=0,
                                      bytes_accessed=bytes_accessed),
    )(idx_packed, w_bd)

    # Contiguous (free) reshapes back to the natural (B, L, E) layouts.
    flat = out.reshape(n_rows_pad * PACK, E)[:ntok]
    pep_emb = flat[:B * Lp].reshape(B, Lp, E)
    mhc_emb = flat[B * Lp:].reshape(B, Lm, E)
    return pep_emb, mhc_emb, masks


if __name__ == "__main__":
    # Small shapes consistent with the module: batch=2, vocab=22 (len(ACIDS)),
    # emb_size=32, peptide_pad=3, peptide_len=14, mhc_len=34.
    B = 2
    VOCAB = 22
    EMB = 32
    PEP_PAD = 3
    PEP_LEN = 14
    MHC_LEN = 34
    PAD_IDX = 0

    key = jax.random.PRNGKey(0)
    k_pidx, k_midx, k_pw, k_mw = jax.random.split(key, 4)

    peptide_x = jax.random.randint(k_pidx, (B, PEP_LEN), 1, VOCAB, dtype=jnp.int32)
    # mimic right-padded peptides so the mask has both True and False entries
    peptide_x = peptide_x.at[0, 9:].set(PAD_IDX)
    peptide_x = peptide_x.at[1, 11:].set(PAD_IDX)
    mhc_x = jax.random.randint(k_midx, (B, MHC_LEN), 1, VOCAB, dtype=jnp.int32)

    # reset_parameters(): uniform(-0.1, 0.1)
    pep_w = jax.random.uniform(k_pw, (VOCAB, EMB), jnp.float32, -0.1, 0.1)
    mhc_w = jax.random.uniform(k_mw, (VOCAB, EMB), jnp.float32, -0.1, 0.1)

    pep_emb, mhc_emb, masks = embedding_layer(
        peptide_x, mhc_x, pep_w, mhc_w, peptide_pad=PEP_PAD, padding_idx=PAD_IDX)
    jax.block_until_ready((pep_emb, mhc_emb, masks))

    # Plain-JAX reference (independent of the kernel path).
    ref_pep = pep_w[peptide_x]
    ref_mhc = mhc_w[mhc_x]
    ref_mask = peptide_x[:, PEP_PAD:PEP_LEN - PEP_PAD] != PAD_IDX

    assert pep_emb.shape == (B, PEP_LEN, EMB)
    assert mhc_emb.shape == (B, MHC_LEN, EMB)
    assert masks.shape == (B, PEP_LEN - 2 * PEP_PAD)
    assert masks.dtype == jnp.bool_
    assert jnp.allclose(pep_emb, ref_pep, atol=1e-6, rtol=1e-6), "peptide embedding mismatch"
    assert jnp.allclose(mhc_emb, ref_mhc, atol=1e-6, rtol=1e-6), "mhc embedding mismatch"
    assert jnp.array_equal(masks, ref_mask), "mask mismatch"

    print("KERNEL_OK")
</pallas_src>

<mosaic_0001>
module attributes {stable_mosaic.version = 11 : i64} {
  func.func @embedding_kernel(%arg0: i32, %arg1: memref<24x4xi32, #tpu.memory_space<vmem>>, %arg2: memref<176x128xf32, #tpu.memory_space<vmem>>, %arg3: memref<24x128xf32, #tpu.memory_space<vmem>>) attributes {dimension_semantics = [#tpu.dimension_semantics<parallel>], iteration_bounds = array<i64: 1>, scalar_prefetch = 0 : i64, scratch_operands = 0 : i64, tpu.core_type = #tpu.core_type<tc>, window_params = [{transform_indices = @transform_0, window_bounds = array<i64: 24, 4>}, {pipeline_mode = #tpu.pipeline_mode<synchronous>, transform_indices = @transform_1, window_bounds = array<i64: 176, 128>}, {transform_indices = @transform_2, window_bounds = array<i64: 24, 128>}]} {
    %c0 = arith.constant 0 : index
    %c0_0 = arith.constant 0 : index
    %0 = vector.load %arg1[%c0, %c0_0] : memref<24x4xi32, #tpu.memory_space<vmem>>, vector<24x4xi32>
    %1 = tpu.iota {dimensions = array<i32: 1>} : vector<24x176xi32>
    %2 = vector.extract_strided_slice %0 {offsets = [0, 0], sizes = [24, 1], strides = [1, 1]} : vector<24x4xi32> to vector<24x1xi32>
    %3 = vector.broadcast %2 : vector<24x1xi32> to vector<24x176xi32>
    %4 = arith.cmpi eq, %3, %1 : vector<24x176xi32>
    %5 = arith.extui %4 : vector<24x176xi1> to vector<24x176xi32>
    %6 = arith.sitofp %5 : vector<24x176xi32> to vector<24x176xf32>
    %7 = vector.extract_strided_slice %0 {offsets = [0, 1], sizes = [24, 1], strides = [1, 1]} : vector<24x4xi32> to vector<24x1xi32>
    %8 = vector.broadcast %7 : vector<24x1xi32> to vector<24x176xi32>
    %9 = arith.cmpi eq, %8, %1 : vector<24x176xi32>
    %10 = arith.extui %9 : vector<24x176xi1> to vector<24x176xi32>
    %11 = arith.sitofp %10 : vector<24x176xi32> to vector<24x176xf32>
    %12 = arith.addf %6, %11 : vector<24x176xf32>
    %13 = vector.extract_strided_slice %0 {offsets = [0, 2], sizes = [24, 1], strides = [1, 1]} : vector<24x4xi32> to vector<24x1xi32>
    %14 = vector.broadcast %13 : vector<24x1xi32> to vector<24x176xi32>
    %15 = arith.cmpi eq, %14, %1 : vector<24x176xi32>
    %16 = arith.extui %15 : vector<24x176xi1> to vector<24x176xi32>
    %17 = arith.sitofp %16 : vector<24x176xi32> to vector<24x176xf32>
    %18 = arith.addf %12, %17 : vector<24x176xf32>
    %19 = vector.extract_strided_slice %0 {offsets = [0, 3], sizes = [24, 1], strides = [1, 1]} : vector<24x4xi32> to vector<24x1xi32>
    %20 = vector.broadcast %19 : vector<24x1xi32> to vector<24x176xi32>
    %21 = arith.cmpi eq, %20, %1 : vector<24x176xi32>
    %22 = arith.extui %21 : vector<24x176xi1> to vector<24x176xi32>
    %23 = arith.sitofp %22 : vector<24x176xi32> to vector<24x176xf32>
    %24 = arith.addf %18, %23 : vector<24x176xf32>
    %c0_1 = arith.constant 0 : index
    %c0_2 = arith.constant 0 : index
    %25 = vector.load %arg2[%c0_1, %c0_2] : memref<176x128xf32, #tpu.memory_space<vmem>>, vector<176x128xf32>
    %cst = arith.constant dense<0.000000e+00> : vector<24x128xf32>
    %26 = tpu.matmul %24, %25, %cst {dimension_numbers = #tpu.dot_dimension_numbers<[1], [0], [0], [1], [0, 0, 1, 1], [], []>} : vector<24x176xf32>, vector<176x128xf32>, vector<24x128xf32> -> vector<24x128xf32>
    %c0_3 = arith.constant 0 : index
    %c0_4 = arith.constant 0 : index
    %27 = vector.load %arg3[%c0_3, %c0_4] : memref<24x128xf32, #tpu.memory_space<vmem>>, vector<24x128xf32>
    tpu.vector_store %arg3[%c0_3, %c0_4], %26 {strides = array<i32>} : memref<24x128xf32, #tpu.memory_space<vmem>>, vector<24x128xf32>,
    return
  }
  func.func @transform_0(%arg0: i32) -> (i32, i32) {
    %c0_i32 = arith.constant 0 : i32
    %c0_i32_0 = arith.constant 0 : i32
    return %arg0, %c0_i32 : i32, i32
  }
  func.func @transform_1(%arg0: i32) -> (i32, i32) {
    %c0_i32 = arith.constant 0 : i32
    %c0_i32_0 = arith.constant 0 : i32
    %c0_i32_1 = arith.constant 0 : i32
    return %c0_i32, %c0_i32_0 : i32, i32
  }
  func.func @transform_2(%arg0: i32) -> (i32, i32) {
    %c0_i32 = arith.constant 0 : i32
    %c0_i32_0 = arith.constant 0 : i32
    return %arg0, %c0_i32 : i32, i32
  }
}

</mosaic_0001>

<bundles_post_ra>
// kernel: tpu_custom_call.1
= control target key start
LH: loop header
LB: loop body
LE: loop exit
PB: predicated region body
PF: predicated region fallthrough
CT: control target
= control target key end

     0   :  { %7 = vsyncpa [#allocation3], 0  ;;  %s580_s0 = inlined_call_operand.vmem [shape: s32[24,4], index: 0, kind: input, shape index: {}]   ;;  %s581_s1 = inlined_call_operand.hbm [shape: f32[176,128], index: 1, kind: input, shape index: {}]   ;;  %s582_s2 = inlined_call_operand.hbm [shape: f32[24,128], index: 2, kind: output, shape index: {}]  }
   0x1   :  { %8 = vsyncpa [#allocation4], 0  ;;  %s438_s9 = smov [#allocation2]   ;;  %s390_s13 = scalar_lea.hbm %s581_s1, 2816 }
   0x2   :  { %s16_s10 = sshll.u32 %s438_s9, 4  ;;  %p391_p0 = scmp.ne.s32.totalorder %s581_s1, %s390_s13  ;;  %s17_s10 = int_to_ptr.vmem [resolvable:$true] %s16_s10 }
   0x3   :  { %p394_p1 = scmp.lt.u32.totalorder %s390_s13, %s581_s1 }
   0x5   :  { %p396_p2 = pnand %p394_p1, %p391_p0 }
   0x7   :  { %399 = shalt.err (!%p396_p2)
}
   0x8   :  { %s400_s18 = scalar_lea.vmem %s17_s10, 2816  ;;  %p405_p4 = scmp.lt.s32.totalorder %s17_s10, %s17_s10 }
   0x9   :  { %p401_p3 = scmp.ne.s32.totalorder %s17_s10, %s400_s18  ;;  %p406_p5 = scmp.lt.s32.totalorder %s400_s18, %s400_s18 }
   0xb   :  { %p407_p6 = por %p406_p5, %p405_p4 }
   0xd   :  { %p408_p7 = pnand %p407_p6, %p401_p3 }
   0xf   :  { %411 = shalt.err (!%p408_p7)
}
  0x10   :  { %s439_s19 = smov 128   ;;  %s440_s20 = smov 8  }
  0x11   :  { %22 = dma.hbm_to_vmem [thread:$0]  %s581_s1, 2816, %s17_s10, [#allocation3], %s439_s19, %s439_s19, %s440_s20  }
  0x12   :  { %434 = dma.done.wait [#allocation3], 2816  }
  0x13   :  { %435 = vsyncadd [#allocation3], 4294964480  ;;  %v441_v0 = vmov 2   ;;  %v442_v1 = vmov 0   ;;  %v443_v2 = vmov 0.0|0.0   ;;  %v27_v3 = vld [vmem:[%s580_s0 + $0x8] sm:$0xff]  ;;  %v29_v41 = vlaneseq }
  0x14   :  { %384 = vset.pattern.permute.xlu1 %v441_v0  ;;  %382 = vset.pattern.permute.xlu0 %v442_v1  ;;  %v158_v4 = vld [vmem:[#allocation2] sm:$0xff]  ;;  %v159_v5 = vld [vmem:[#allocation2 + $0x8] sm:$0xff]  ;;  %v160_v6 = vld [vmem:[#allocation2 + $0x10] sm:$0xff]  ;;  %v444_v11 = vmov 1   ;;  %v445_v21 = vmov 3   ;;  %v446_v48 = vmov 0.0  }
  0x15   :  { %350 = vmatprep.subr.bf16.mxu1 %v443_v2  ;;  %317 = vmatprep.subr.bf16.mxu0 %v443_v2  ;;  %v318_v7 = vpack.c.bf16 %v159_v5, %v158_v4  ;;  %v161_v8 = vld [vmem:[#allocation2 + $0x18] sm:$0xff]  ;;  %v26_v9 = vld [vmem:[%s580_s0] sm:$0xff]  ;;  %v163_v13 = vld [vmem:[#allocation2 + $0x28] sm:$0xff]  ;;  %v509_v42 = vand.u32 127, %v29_v41  ;;  %vm180_vm8 = vcmask 392192  }
  0x16   :  { %96 = vperm.xlu1 %384, %v27_v3   ;;  %36 = vperm.xlu0 %382, %v27_v3   ;;  %v321_v10 = vpack.c.bf16 %v161_v8, %v160_v6  ;;  %v162_v12 = vld [vmem:[#allocation2 + $0x20] sm:$0xff]  ;;  %v28_v14 = vld [vmem:[%s580_s0 + $0x10] sm:$0xff]  ;;  %v165_v17 = vld [vmem:[#allocation2 + $0x38] sm:$0xff]  ;;  %s447_s0 = smov [#allocation5]  }
  0x17   :  { %361 = vmatpush1.bf16.msra.mxu1 %v318_v7  ;;  %319 = vmatpush1.bf16.msra.mxu0 %v318_v7  ;;  %v324_v15 = vpack.c.bf16 %v163_v13, %v162_v12  ;;  %v164_v16 = vld [vmem:[#allocation2 + $0x30] sm:$0xff]  ;;  %v166_v19 = vld [vmem:[#allocation2 + $0x40] sm:$0xff]  ;;  %v167_v20 = vld [vmem:[#allocation2 + $0x48] sm:$0xff]  ;;  %v512_v45 = vadd.s32 128, %v509_v42  ;;  %s278_s28 = sshll.u32 %s447_s0, 4  ;;  %s279_s28 = int_to_ptr.vmem [resolvable:$true] %s278_s28 }
  0x18   :  { %351 = vmatprep.subr.bf16.mxu1 %v443_v2  ;;  %320 = vmatprep.subr.bf16.mxu0 %v443_v2  ;;  %v327_v18 = vpack.c.bf16 %v165_v17, %v164_v16  ;;  %v330_v22 = vpack.c.bf16 %v167_v20, %v166_v19  ;;  %v168_v23 = vld [vmem:[#allocation2 + $0x50] sm:$0xff]  ;;  %v169_v24 = vld [vmem:[#allocation2 + $0x58] sm:$0xff]  ;;  %v170_v26 = vld [vmem:[#allocation2 + $0x60] sm:$0xff]  ;;  %s412_s29 = scalar_lea.vmem %s279_s28, 384  ;;  %p417_p9 = scmp.lt.s32.totalorder %s279_s28, %s279_s28 }
  0x19   :  { %v333_v25 = vpack.c.bf16 %v169_v24, %v168_v23  ;;  %v171_v27 = vld [vmem:[#allocation2 + $0x68] sm:$0xff]  ;;  %v172_v29 = vld [vmem:[#allocation2 + $0x70] sm:$0xff]  ;;  %v173_v30 = vld [vmem:[#allocation2 + $0x78] sm:$0xff]  ;;  %p413_p8 = scmp.ne.s32.totalorder %s279_s28, %s412_s29  ;;  %p418_p10 = scmp.lt.s32.totalorder %s412_s29, %s412_s29 }
  0x1a   :  { %385 = vset.pattern.permute.xlu1 %v442_v1  ;;  %383 = vset.pattern.permute.xlu0 %v444_v11  ;;  %v336_v28 = vpack.c.bf16 %v171_v27, %v170_v26  ;;  %v339_v31 = vpack.c.bf16 %v173_v30, %v172_v29  ;;  %v174_v32 = vld [vmem:[#allocation2 + $0x80] sm:$0xff]  ;;  %v175_v33 = vld [vmem:[#allocation2 + $0x88] sm:$0xff]  ;;  %v176_v35 = vld [vmem:[#allocation2 + $0x90] sm:$0xff] }
  0x1b   :  { %63 = vperm.xlu0 %383, %v27_v3   ;;  %33 = vperm.xlu1 %385, %v26_v9   ;;  %v342_v34 = vpack.c.bf16 %v175_v33, %v174_v32  ;;  %v177_v36 = vld [vmem:[#allocation2 + $0x98] sm:$0xff]  ;;  %v178_v38 = vld [vmem:[#allocation2 + $0xa0] sm:$0xff]  ;;  %v179_v39 = vld [vmem:[#allocation2 + $0xa8] sm:$0xff]  ;;  %p419_p11 = por %p418_p10, %p417_p9 }
  0x1c   :  { %362 = vmatpush1.bf16.msra.mxu1 %v321_v10  ;;  %322 = vmatpush1.bf16.msra.mxu0 %v321_v10  ;;  %v345_v37 = vpack.c.bf16 %v177_v36, %v176_v35  ;;  %v348_v40 = vpack.c.bf16 %v179_v39, %v178_v38 }
  0x1d   :  { %352 = vmatprep.subr.bf16.mxu1 %v443_v2  ;;  %323 = vmatprep.subr.bf16.mxu0 %v443_v2  ;;  %p420_p12 = pnand %p419_p11, %p413_p8 }
  0x1f   :  { %60 = vperm.xlu0 %383, %v26_v9   ;;  %39 = vperm.xlu1 %385, %v28_v14  }
  0x20   :  { %363 = vmatpush1.bf16.msra.mxu1 %v324_v15  ;;  %325 = vmatpush1.bf16.msra.mxu0 %v324_v15 }
  0x21   :  { %353 = vmatprep.subr.bf16.mxu1 %v443_v2  ;;  %326 = vmatprep.subr.bf16.mxu0 %v443_v2 }
  0x23   :  { %387 = vset.pattern.permute.xlu0 %v445_v21  ;;  %386 = vset.pattern.permute.xlu1 %v444_v11 }
  0x24   :  { %129 = vperm.xlu0 %387, %v27_v3   ;;  %66 = vperm.xlu1 %386, %v28_v14  }
  0x25   :  { %364 = vmatpush1.bf16.msra.mxu1 %v327_v18  ;;  %328 = vmatpush1.bf16.msra.mxu0 %v327_v18 }
  0x26   :  { %354 = vmatprep.subr.bf16.mxu1 %v443_v2  ;;  %329 = vmatprep.subr.bf16.mxu0 %v443_v2 }
  0x28   :  { %388 = vset.pattern.permute.xlu1 %v441_v0  ;;  %126 = vperm.xlu0 %387, %v26_v9  }
  0x29   :  { %93 = vperm.xlu1 %388, %v26_v9   ;;  %365 = vmatpush1.bf16.msra.mxu1 %v330_v22 }
  0x2a   :  { %355 = vmatprep.subr.bf16.mxu1 %v443_v2  ;;  %331 = vmatpush1.bf16.msra.mxu0 %v330_v22 }
  0x2b   :  { %332 = vmatprep.subr.bf16.mxu0 %v443_v2 }
  0x2d   :  { %99 = vperm.xlu1 %388, %v28_v14   ;;  %366 = vmatpush1.bf16.msra.mxu1 %v333_v25 }
  0x2e   :  { %356 = vmatprep.subr.bf16.mxu1 %v443_v2  ;;  %334 = vmatpush1.bf16.msra.mxu0 %v333_v25 }
  0x2f   :  { %335 = vmatprep.subr.bf16.mxu0 %v443_v2 }
  0x31   :  { %389 = vset.pattern.permute.xlu1 %v445_v21  ;;  %367 = vmatpush1.bf16.msra.mxu1 %v336_v28 }
  0x32   :  { %132 = vperm.xlu1 %389, %v28_v14   ;;  %357 = vmatprep.subr.bf16.mxu1 %v443_v2 }
  0x33   :  { %337 = vmatpush1.bf16.msra.mxu0 %v336_v28 }
  0x34   :  { %338 = vmatprep.subr.bf16.mxu0 %v443_v2 }
  0x35   :  { %368 = vmatpush1.bf16.msra.mxu1 %v339_v31 }
  0x36   :  { %358 = vmatprep.subr.bf16.mxu1 %v443_v2 }
  0x37   :  { %340 = vmatpush1.bf16.msra.mxu0 %v339_v31 }
  0x38   :  { %341 = vmatprep.subr.bf16.mxu0 %v443_v2 }
  0x39   :  { %369 = vmatpush1.bf16.msra.mxu1 %v342_v34 }
  0x3a   :  { %359 = vmatprep.subr.bf16.mxu1 %v443_v2 }
  0x3b   :  { %343 = vmatpush1.bf16.msra.mxu0 %v342_v34 }
  0x3c   :  { %344 = vmatprep.subr.bf16.mxu0 %v443_v2 }
  0x3d   :  { %370 = vmatpush1.bf16.msra.mxu1 %v345_v37 }
  0x3e   :  { %360 = vmatprep.subr.bf16.mxu1 %v443_v2 }
  0x3f   :  { %346 = vmatpush1.bf16.msra.mxu0 %v345_v37 }
  0x40   :  { %347 = vmatprep.subr.bf16.mxu0 %v443_v2 }
  0x41   :  { %371 = vmatpush1.bf16.msra.mxu1 %v348_v40 }
  0x43   :  { %349 = vmatpush1.bf16.msra.mxu0 %v348_v40 }
  0x95   :  { %v97_v43 = vpop.permute.xlu1 %96  ;;  %v37_v44 = vpop.permute.xlu0 %36 }
  0x96   :  { %vm43_vm0 = vcmp.eq.s32.totalorder %v37_v44, %v509_v42  ;;  %vm44_vm1 = vcmp.eq.s32.totalorder %v37_v44, %v512_v45  ;;  %vm103_vm4 = vcmp.eq.s32.totalorder %v97_v43, %v509_v42  ;;  %vm104_vm5 = vcmp.eq.s32.totalorder %v97_v43, %v512_v45 }
  0x97   :  { %v292_v49 = vsel %vm43_vm0, 1.0, %v446_v48  ;;  %v293_v50 = vsel %vm44_vm1, 1.0, %v446_v48  ;;  %v304_v57 = vsel %vm103_vm4, 1.0, %v446_v48  ;;  %v305_v58 = vsel %vm104_vm5, 1.0, %v446_v48 }
  0x9a   :  { %v64_v46 = vpop.permute.xlu0 %63  ;;  %v34_v47 = vpop.permute.xlu1 %33 }
  0x9b   :  { %vm70_vm2 = vcmp.eq.s32.totalorder %v64_v46, %v509_v42  ;;  %vm71_vm3 = vcmp.eq.s32.totalorder %v64_v46, %v512_v45  ;;  %vm41_vm9 = vcmp.eq.s32.totalorder %v34_v47, %v509_v42  ;;  %vm42_vm10 = vcmp.eq.s32.totalorder %v34_v47, %v512_v45 }
  0x9c   :  { %v298_v51 = vsel %vm70_vm2, 1.0, %v446_v48  ;;  %v299_v52 = vsel %vm71_vm3, 1.0, %v446_v48  ;;  %v290_v5 = vsel %vm41_vm9, 1.0, %v446_v48  ;;  %v291_v6 = vsel %vm42_vm10, 1.0, %v446_v48 }
  0x9d   :  { %v88_v55 = vadd.f32 %v298_v51, %v292_v49  ;;  %v89_v56 = vadd.f32 %v299_v52, %v293_v50 }
  0x9e   :  { %v61_v53 = vpop.permute.xlu0 %60  ;;  %v40_v54 = vpop.permute.xlu1 %39 }
  0x9f   :  { %vm68_vm6 = vcmp.eq.s32.totalorder %v61_v53, %v509_v42  ;;  %vm69_vm7 = vcmp.eq.s32.totalorder %v61_v53, %v512_v45  ;;  %v121_v61 = vadd.f32 %v304_v57, %v88_v55  ;;  %v122_v62 = vadd.f32 %v305_v58, %v89_v56 }
  0xa0   :  { %v296_v63 = vsel %vm68_vm6, 1.0, %v446_v48  ;;  %v297_v0 = vsel %vm69_vm7, 1.0, %v446_v48  ;;  %vm45_vm3 = vcmp.eq.s32.totalorder %v40_v54, %v509_v42  ;;  %vm46_vm4 = vcmp.eq.s32.totalorder %v40_v54, %v512_v45 }
  0xa1   :  { %v86_v8 = vadd.f32 %v296_v63, %v290_v5  ;;  %v87_v9 = vadd.f32 %v297_v0, %v291_v6  ;;  %v294_v22 = vsel %vm45_vm3, 1.0, %v446_v48  ;;  %v295_v23 = vsel %vm46_vm4, 1.0, %v446_v48 }
  0xa3   :  { %v130_v59 = vpop.permute.xlu0 %129  ;;  %v67_v60 = vpop.permute.xlu1 %66 }
  0xa4   :  { %vm136_vm11 = vcmp.eq.s32.totalorder %v130_v59, %v509_v42  ;;  %vm137_vm12 = vcmp.eq.s32.totalorder %v130_v59, %v512_v45  ;;  %vm72_vm15 = vcmp.eq.s32.totalorder %v67_v60, %v509_v42  ;;  %vm73_vm0 = vcmp.eq.s32.totalorder %v67_v60, %v512_v45 }
  0xa5   :  { %v310_v1 = vsel %vm136_vm11, 1.0, %v446_v48  ;;  %v311_v2 = vsel %vm137_vm12, 1.0, %v446_v48  ;;  %v300_v17 = vsel %vm72_vm15, 1.0, %v446_v48  ;;  %v301_v18 = vsel %vm73_vm0, 1.0, %v446_v48 }
  0xa6   :  { %v154_v3 = vadd.f32 %v310_v1, %v121_v61  ;;  %v155_v4 = vadd.f32 %v311_v2, %v122_v62  ;;  %v90_v26 = vadd.f32 %v300_v17, %v294_v22  ;;  %v91_v27 = vadd.f32 %v301_v18, %v295_v23 }
  0xa7   :  { %v127_v7 = vpop.permute.xlu0 %126 }
  0xa8   :  { %315 = vmatprep.mubr.msk.f32.mxu1 %vm180_vm8, %v155_v4  ;;  %v94_v10 = vpop.permute.xlu1 %93  ;;  %vm134_vm13 = vcmp.eq.s32.totalorder %v127_v7, %v509_v42  ;;  %vm135_vm14 = vcmp.eq.s32.totalorder %v127_v7, %v512_v45 }
  0xa9   :  { %vm101_vm1 = vcmp.eq.s32.totalorder %v94_v10, %v509_v42  ;;  %vm102_vm2 = vcmp.eq.s32.totalorder %v94_v10, %v512_v45  ;;  %260 = vmatmul.mubr.f32.vlgmr.msra.gmra.mrb[0].mxu1 %v154_v3  ;;  %v308_v13 = vsel %vm134_vm13, 1.0, %v446_v48  ;;  %v309_v14 = vsel %vm135_vm14, 1.0, %v446_v48 }
  0xaa   :  { %v302_v11 = vsel %vm101_vm1, 1.0, %v446_v48  ;;  %v303_v12 = vsel %vm102_vm2, 1.0, %v446_v48 }
  0xab   :  { %v119_v15 = vadd.f32 %v302_v11, %v86_v8  ;;  %v120_v16 = vadd.f32 %v303_v12, %v87_v9 }
  0xac   :  { %v100_v19 = vpop.permute.xlu1 %99 }
  0xad   :  { %v152_v20 = vadd.f32 %v308_v13, %v119_v15  ;;  %vm105_vm5 = vcmp.eq.s32.totalorder %v100_v19, %v509_v42  ;;  %vm106_vm6 = vcmp.eq.s32.totalorder %v100_v19, %v512_v45  ;;  %v153_v21 = vadd.f32 %v309_v14, %v120_v16 }
  0xae   :  { %v306_v24 = vsel %vm105_vm5, 1.0, %v446_v48  ;;  %v307_v25 = vsel %vm106_vm6, 1.0, %v446_v48 }
  0xaf   :  { %314 = vmatprep.mubr.msk.f32.mxu0 %vm180_vm8, %v153_v21  ;;  %v123_v29 = vadd.f32 %v306_v24, %v90_v26  ;;  %v124_v30 = vadd.f32 %v307_v25, %v91_v27 }
  0xb0   :  { %255 = vmatmul.mubr.f32.vlgmr.msra.gmra.mrb[0].mxu0 %v152_v20 }
  0xb1   :  { %v133_v28 = vpop.permute.xlu1 %132 }
  0xb2   :  { %vm138_vm7 = vcmp.eq.s32.totalorder %v133_v28, %v509_v42  ;;  %vm139_vm9 = vcmp.eq.s32.totalorder %v133_v28, %v512_v45 }
  0xb3   :  { %v312_v31 = vsel %vm138_vm7, 1.0, %v446_v48  ;;  %v313_v32 = vsel %vm139_vm9, 1.0, %v446_v48 }
  0xb4   :  { %v156_v33 = vadd.f32 %v312_v31, %v123_v29  ;;  %v157_v34 = vadd.f32 %v313_v32, %v124_v30 }
  0xb6   :  { %316 = vmatprep.mubr.msk.f32.mxu1 %vm180_vm8, %v157_v34 }
  0xb7   :  { %265 = vmatmul.mubr.f32.gmra.mrb[2].mxu1 %v156_v33 }
 0x17c   :  { %v261_v35 = vpop.f32.mrb[0].mxu1 }
 0x17d   :  { %271 = vst [vmem:[#allocation5 + $0x8] sm:$0xff] %v261_v35  ;;  %v263_v36 = vpop.f32.mrb[1].mxu1 }
 0x183   :  { %v256_v37 = vpop.f32.mrb[0].mxu0 }
 0x184   :  { %270 = vst [vmem:[#allocation5] sm:$0xff] %v256_v37  ;;  %v258_v38 = vpop.f32.mrb[1].mxu0 }
 0x18a   :  { %v266_v39 = vpop.f32.mrb[2].mxu1 }
 0x18b   :  { %272 = vst [vmem:[#allocation5 + $0x10] sm:$0xff] %v266_v39  ;;  %v268_v40 = vpop.f32.mrb[3].mxu1 }
 0x18c   :  { %423 = shalt.err (!%p420_p12)
}
 0x18d   :  { %s424_s4 = scalar_lea.hbm %s582_s2, 384 }
 0x18e   :  { %p425_p13 = scmp.ne.s32.totalorder %s582_s2, %s424_s4  ;;  %p428_p0 = scmp.lt.u32.totalorder %s424_s4, %s582_s2 }
 0x190   :  { %p430_p1 = pnand %p428_p0, %p425_p13 }
 0x192   :  { %433 = shalt.err (!%p430_p1)
}
 0x193   :  { %284 = dma.vmem_to_hbm [thread:$0]  %s279_s28, 384, %s582_s2, [#allocation4], %s439_s19, %s439_s19, %s440_s20  }
 0x194   :  { %436 = dma.done.wait [#allocation4], 384  }
 0x195   :  { %437 = vsyncadd [#allocation4], 4294966912 }
 0x196   :  { %288 = vsyncpa [#allocation3], 1 }
 0x197   :  { %289 = vsyncpa [#allocation4], 1 }

</bundles_post_ra>
